<compile_context>
chip_gen: v5e
topology: v5e:2x2
jax: 0.10.0
libtpu: 0.0.40
codegen_flags: <defaults>
</compile_context>

<pallas_src>
import math
from typing import NamedTuple

import jax
import jax.numpy as jnp
from jax.experimental import pallas as pl
from jax.experimental.pallas import tpu as pltpu

_LANE = 128
_VMEM_LIMIT_BYTES = 32 * 1024 * 1024       # safe scoped-VMEM limit on v5e/v6e/v7x
_VMEM_TILE_BUDGET = 24 * 1024 * 1024       # keep tile footprint under the limit (v7x: 64 MiB phys)
_RESIDENT_W_MAX_BYTES = 8 * 1024 * 1024    # double-buffered weight-slab budget for resident path
_XLA_FALLBACK_MAX_ELEMS = 128 * 128 * 256  # padded M*Kp*Np below this -> plain XLA dot


def _round_up(a, b):
    return -(-a // b) * b


def _round_down(a, b):
    return (a // b) * b


def _sublane_align(dtype):
    # f32 -> 8, bf16 -> 16, int8/fp8 -> 32 (sub-32-bit dtypes pack along sublanes).
    return max(8, 32 // jnp.dtype(dtype).itemsize)


def _largest_dividing_tile(total, target, quantum):
    # `total` is a multiple of `quantum`; return the largest multiple of
    # `quantum` <= min(target, total) that divides `total`.
    t = min(_round_up(target, quantum), total)
    t = max(quantum, _round_down(t, quantum))
    while total % t != 0:
        t -= quantum
    return t


# --------------------------------------------------------------------------- kernels


def _mixer_resident_kernel(x_ref, w_ref, o_ref):
    # Weight block is the full (Kp, Np) slab with a constant index_map: DMA'd
    # once and kept resident across the M grid. One MXU pass per row tile,
    # written straight to the lane-dense output block.
    o_ref[...] = jnp.dot(
        x_ref[...], w_ref[...], preferred_element_type=jnp.float32
    ).astype(o_ref.dtype)


def _mixer_tiled_kernel_f32out(x_ref, w_ref, o_ref):
    # f32 output block is resident across the trailing K axis -> accumulate in
    # place; no scratch, no finalize copy/cast.
    @pl.when(pl.program_id(2) == 0)
    def _init():
        o_ref[...] = jnp.zeros_like(o_ref)

    o_ref[...] += jnp.dot(x_ref[...], w_ref[...], preferred_element_type=jnp.float32)


def _mixer_tiled_kernel_acc(x_ref, w_ref, o_ref, acc_ref):
    k = pl.program_id(2)

    @pl.when(k == 0)
    def _init():
        acc_ref[...] = jnp.zeros_like(acc_ref)

    acc_ref[...] += jnp.dot(x_ref[...], w_ref[...], preferred_element_type=jnp.float32)

    @pl.when(k == pl.num_programs(2) - 1)
    def _finalize():
        o_ref[...] = acc_ref[...].astype(o_ref.dtype)


# --------------------------------------------------------------------------- wrapper


class PreparedMixerWeights(NamedTuple):
    w_slab: jax.Array    # [Kp, Np] concat of (W_i / sqrt(n_norm)), zero padded, operand dtype
    k_total: int         # true K  (= sum of branch C_in)
    c_out: int           # true N
    c_ins: tuple         # per-branch C_in (for input validation)
    param_dtype: jnp.dtype  # original weight dtype (used for the default output dtype)


def prepare_mixer_weights(ws, n_norm=1, *, operand_dtype=None):
    """One-off parameter setup: concat branch weights along K, fold 1/sqrt(n_norm),
    cast to the MXU operand dtype, and pad K/N up to 128-lane multiples."""
    assert len(ws) > 0
    c_out = int(ws[0].shape[1])
    assert all(int(w.shape[1]) == c_out for w in ws), "all branches share C_out"
    c_ins = tuple(int(w.shape[0]) for w in ws)
    k_total = sum(c_ins)

    param_dtype = jnp.result_type(*[w.dtype for w in ws])
    op_dtype = jnp.dtype(param_dtype if operand_dtype is None else operand_dtype)

    scale = 1.0 / math.sqrt(float(n_norm))
    kp = _round_up(k_total, _LANE)
    np_pad = _round_up(c_out, _LANE)

    parts = [(w.astype(jnp.float32) * scale).astype(op_dtype) for w in ws]
    w_cat = parts[0] if len(parts) == 1 else jnp.concatenate(parts, axis=0)
    if kp > k_total or np_pad > c_out:
        w_cat = jnp.pad(w_cat, ((0, kp - k_total), (0, np_pad - c_out)))
    return PreparedMixerWeights(
        w_slab=w_cat, k_total=k_total, c_out=c_out, c_ins=c_ins, param_dtype=param_dtype
    )


def mixer_forward(xs, weights, n_norm=1, *, out_dtype=None, path=None,
                  tm=None, tn=None, tk=None):
    """Mixer forward: y = sum_i xs[i] @ W_i / sqrt(n_norm), shape [N_points, C_out].

    `weights` is either a raw list of per-branch [C_in_i, C_out] weights
    (prepared on the fly, honoring `n_norm`) or a PreparedMixerWeights
    (n_norm is already folded in; the argument is ignored).
    `path` in {None, "resident", "tiled", "xla"} overrides dispatch.
    """
    assert len(xs) > 0
    if not isinstance(weights, PreparedMixerWeights):
        weights = prepare_mixer_weights(list(weights), n_norm=n_norm)

    m = int(xs[0].shape[0])
    assert all(int(x.shape[0]) == m for x in xs), "all branches share N_points"
    assert tuple(int(x.shape[1]) for x in xs) == weights.c_ins, "C_in mismatch"

    w_slab = weights.w_slab
    kp, np_pad = (int(s) for s in w_slab.shape)
    k_total, c_out = weights.k_total, weights.c_out

    op_dtype = jnp.dtype(w_slab.dtype)
    if out_dtype is None:
        out_dtype = jnp.result_type(*[x.dtype for x in xs], weights.param_dtype)
    out_dtype = jnp.dtype(out_dtype)

    ib = op_dtype.itemsize
    ob = out_dtype.itemsize
    sub = max(_sublane_align(op_dtype), _sublane_align(out_dtype))

    # ---- tiny-problem fallback: pallas_call overhead + 128-lane padding dominate.
    if path is None and m * kp * np_pad <= _XLA_FALLBACK_MAX_ELEMS:
        path = "xla"
    if path == "xla":
        x_cat = xs[0] if len(xs) == 1 else jnp.concatenate(xs, axis=1)
        y = jnp.dot(x_cat.astype(op_dtype), w_slab[:k_total, :c_out],
                    preferred_element_type=jnp.float32)
        return y.astype(out_dtype)

    if path is None:
        path = "resident" if 2 * kp * np_pad * ib <= _RESIDENT_W_MAX_BYTES else "tiled"
    assert path in ("resident", "tiled"), f"unknown path {path!r}"

    # ---- tile selection (VMEM budget <= ~24 MiB on all generations) ----------
    use_acc_scratch = False
    tn_ = tk_ = None
    if path == "resident":
        tm_target = 1024 if tm is None else tm
        w_bytes = 2 * kp * np_pad * ib                   # pipeline double-buffers the slab
        per_row = 2 * kp * ib + 2 * np_pad * ob          # x + out double buffers, per row
        cap = max(sub, _round_down(max(0, _VMEM_TILE_BUDGET - w_bytes) // per_row, sub))
        tm_ = max(sub, _round_down(min(tm_target, cap, _round_up(m, sub)), sub))
        # v7x megacore: keep >= 2 tiles on the single parallel axis when possible.
        if m >= 2 * sub:
            tm_ = min(tm_, _round_up(-(-m // 2), sub))
    else:
        tn_ = _largest_dividing_tile(np_pad, 256 if tn is None else tn, _LANE)
        tk_ = _largest_dividing_tile(kp, 512 if tk is None else tk, _LANE)
        use_acc_scratch = out_dtype != jnp.float32
        fixed = 2 * tk_ * tn_ * ib
        per_row = 2 * tk_ * ib + 2 * tn_ * ob + (tn_ * 4 if use_acc_scratch else 0)
        cap = max(sub, _round_down(max(0, _VMEM_TILE_BUDGET - fixed) // per_row, sub))
        tm_target = 512 if tm is None else tm
        tm_ = max(sub, _round_down(min(tm_target, cap, _round_up(m, sub)), sub))
        if (np_pad // tn_) < 2 and m >= 2 * sub:
            tm_ = min(tm_, _round_up(-(-m // 2), sub))

    mp = _round_up(m, tm_)

    # ---- assemble the padded activation slab (single concat pass; row-pad pass
    # only if M is not a tile multiple) ----------------------------------------
    parts = [x.astype(op_dtype) for x in xs]
    if kp > k_total:
        parts.append(jnp.zeros((m, kp - k_total), op_dtype))
    x_p = parts[0] if len(parts) == 1 else jnp.concatenate(parts, axis=1)
    if mp > m:
        x_p = jnp.concatenate([x_p, jnp.zeros((mp - m, kp), op_dtype)], axis=0)

    if path == "resident":
        out = pl.pallas_call(
            _mixer_resident_kernel,
            out_shape=jax.ShapeDtypeStruct((mp, np_pad), out_dtype),
            grid_spec=pltpu.PrefetchScalarGridSpec(
                num_scalar_prefetch=0,
                grid=(mp // tm_,),
                in_specs=[
                    pl.BlockSpec((tm_, kp), lambda i: (i, 0)),
                    pl.BlockSpec((kp, np_pad), lambda i: (0, 0)),  # resident weights
                ],
                out_specs=pl.BlockSpec((tm_, np_pad), lambda i: (i, 0)),
            ),
            compiler_params=pltpu.CompilerParams(
                dimension_semantics=("parallel",),
                vmem_limit_bytes=_VMEM_LIMIT_BYTES,
            ),
        )(x_p, w_slab)
    else:
        kernel = _mixer_tiled_kernel_acc if use_acc_scratch else _mixer_tiled_kernel_f32out
        scratch = [pltpu.VMEM((tm_, tn_), jnp.float32)] if use_acc_scratch else []
        out = pl.pallas_call(
            kernel,
            out_shape=jax.ShapeDtypeStruct((mp, np_pad), out_dtype),
            grid_spec=pltpu.PrefetchScalarGridSpec(
                num_scalar_prefetch=0,
                grid=(mp // tm_, np_pad // tn_, kp // tk_),
                in_specs=[
                    pl.BlockSpec((tm_, tk_), lambda i, j, k: (i, k)),
                    pl.BlockSpec((tk_, tn_), lambda i, j, k: (k, j)),
                ],
                out_specs=pl.BlockSpec((tm_, tn_), lambda i, j, k: (i, j)),
                scratch_shapes=scratch,
            ),
            compiler_params=pltpu.CompilerParams(
                dimension_semantics=("parallel", "parallel", "arbitrary"),
                vmem_limit_bytes=_VMEM_LIMIT_BYTES,
            ),
        )(x_p, w_slab)

    return out[:m, :c_out]


# --------------------------------------------------------------------------- test


if __name__ == "__main__":
    key = jax.random.PRNGKey(0)

    def make_problem(k, n_points, c_ins, c_out):
        ks = jax.random.split(k, 2 * len(c_ins))
        xs, ws = [], []
        for j, c_in in enumerate(c_ins):
            xs.append(jax.random.normal(ks[2 * j], (n_points, c_in), jnp.float32))
            ws.append(jax.random.normal(ks[2 * j + 1], (c_in, c_out), jnp.float32)
                      / math.sqrt(c_in))
        return xs, ws

    def reference(xs, ws, n_norm):
        return sum(x @ w for x, w in zip(xs, ws)) / math.sqrt(n_norm)

    k1, k2 = jax.random.split(key)

    # 1) Typical Mixer shape -> resident-weight Pallas path (weights pre-baked once).
    xs, ws = make_problem(k1, 512, [16, 32, 24], 96)
    prepared = prepare_mixer_weights(ws, n_norm=3)
    y = jax.block_until_ready(mixer_forward(xs, prepared))
    y_ref = reference(xs, ws, 3)
    assert y.shape == (512, 96) and y.dtype == jnp.float32
    assert jnp.allclose(y, y_ref, atol=1e-4, rtol=1e-4), "resident path mismatch"

    # 2) Same problem forced through the 3-D tiled kernel (large-K*N code path).
    y_t = jax.block_until_ready(mixer_forward(xs, prepared, path="tiled"))
    assert jnp.allclose(y_t, y_ref, atol=1e-4, rtol=1e-4), "tiled path mismatch"

    # 3) Sub-tile problem (raw weights, per-call n_norm) -> XLA fallback.
    xs2, ws2 = make_problem(k2, 16, [4, 8, 6], 32)
    y2 = jax.block_until_ready(mixer_forward(xs2, ws2, n_norm=4))
    y2_ref = reference(xs2, ws2, 4)
    assert y2.shape == (16, 32)
    assert jnp.allclose(y2, y2_ref, atol=1e-5, rtol=1e-5), "fallback mismatch"

    print("KERNEL_OK")
</pallas_src>

<mosaic_0001>
module attributes {stable_mosaic.version = 11 : i64} {
  func.func @_mixer_resident_kernel(%arg0: i32, %arg1: memref<256x128xf32, #tpu.memory_space<vmem>>, %arg2: memref<128x128xf32, #tpu.memory_space<vmem>>, %arg3: memref<256x128xf32, #tpu.memory_space<vmem>>) attributes {dimension_semantics = [#tpu.dimension_semantics<parallel>], iteration_bounds = array<i64: 2>, scalar_prefetch = 0 : i64, scratch_operands = 0 : i64, tpu.core_type = #tpu.core_type<tc>, window_params = [{transform_indices = @transform_0, window_bounds = array<i64: 256, 128>}, {pipeline_mode = #tpu.pipeline_mode<synchronous>, transform_indices = @transform_1, window_bounds = array<i64: 128, 128>}, {transform_indices = @transform_2, window_bounds = array<i64: 256, 128>}]} {
    %c0 = arith.constant 0 : index
    %c0_0 = arith.constant 0 : index
    %0 = vector.load %arg1[%c0, %c0_0] : memref<256x128xf32, #tpu.memory_space<vmem>>, vector<256x128xf32>
    %c0_1 = arith.constant 0 : index
    %c0_2 = arith.constant 0 : index
    %1 = vector.load %arg2[%c0_1, %c0_2] : memref<128x128xf32, #tpu.memory_space<vmem>>, vector<128x128xf32>
    %cst = arith.constant dense<0.000000e+00> : vector<256x128xf32>
    %2 = tpu.matmul %0, %1, %cst {dimension_numbers = #tpu.dot_dimension_numbers<[1], [0], [0], [1], [0, 0, 1, 1], [], []>} : vector<256x128xf32>, vector<128x128xf32>, vector<256x128xf32> -> vector<256x128xf32>
    %c0_3 = arith.constant 0 : index
    %c0_4 = arith.constant 0 : index
    %3 = vector.load %arg3[%c0_3, %c0_4] : memref<256x128xf32, #tpu.memory_space<vmem>>, vector<256x128xf32>
    tpu.vector_store %arg3[%c0_3, %c0_4], %2 {strides = array<i32>} : memref<256x128xf32, #tpu.memory_space<vmem>>, vector<256x128xf32>,
    return
  }
  func.func @transform_0(%arg0: i32) -> (i32, i32) {
    %c0_i32 = arith.constant 0 : i32
    %c0_i32_0 = arith.constant 0 : i32
    return %arg0, %c0_i32 : i32, i32
  }
  func.func @transform_1(%arg0: i32) -> (i32, i32) {
    %c0_i32 = arith.constant 0 : i32
    %c0_i32_0 = arith.constant 0 : i32
    %c0_i32_1 = arith.constant 0 : i32
    return %c0_i32, %c0_i32_0 : i32, i32
  }
  func.func @transform_2(%arg0: i32) -> (i32, i32) {
    %c0_i32 = arith.constant 0 : i32
    %c0_i32_0 = arith.constant 0 : i32
    return %arg0, %c0_i32 : i32, i32
  }
}

</mosaic_0001>

<bundles_post_ra>
// kernel: tpu_custom_call.1
= control target key start
LH: loop header
LB: loop body
LE: loop exit
PB: predicated region body
PF: predicated region fallthrough
CT: control target
= control target key end

     0   :  { %7 = vsyncpa [#allocation3], 0  ;;  %s971_s0 = inlined_call_operand.hbm [shape: f32[512,128], index: 0, kind: input, shape index: {}]   ;;  %s972_s1 = inlined_call_operand.hbm [shape: f32[128,128], index: 1, kind: input, shape index: {}]   ;;  %s973_s2 = inlined_call_operand.hbm [shape: f32[512,128], index: 2, kind: output, shape index: {}]  }
   0x1   :  { %9 = vsyncpa [#allocation3 + $0x1], 0 }
   0x2   :  { %10 = vsyncpa [#allocation6], 0 }
   0x3   :  { %11 = vsyncpa [#allocation4], 0 }
   0x4   :  { %13 = vsyncpa [#allocation4 + $0x1], 0  ;;  %s754_s9 = smov 0   ;;  %s756_s10 = smov 0  }
   0x5   :  { %s758_s11 = smov 0   ;;  %s760_s12 = smov 0  }
   0x6 LB: > { %s775_s13 = sadd.s32 4294967295, %s732_s12   ;;  %s475_s14 = sadd.s32 4294967294, %s732_s12   ;;  %s732_s12 = sphi %s760_s12, %s983_s12   ;;  %s728_s11 = sphi %s758_s11, %s982_s11   ;;  %s724_s10 = sphi %s756_s10, %s981_s10   ;;  %s720_s9 = sphi %s754_s9, %s980_s9  }
   0x7   : > { %p39_p0 = scmp.ne.s32.totalorder %s724_s10, %s720_s9  ;;  %p40_p1 = scmp.eq.s32.totalorder %s775_s13, 0 }
   0x8   : > { %p84_p2 = scmp.eq.s32.totalorder %s775_s13, 1  ;;  %p90_p3 = scmp.eq.s32.totalorder %s475_s14, 1 }
   0x9   : > { %p784_p4 = por %p40_p1, %p39_p0  ;;  %p476_p5 = scmp.ge.s32.totalorder %s732_s12, 1 }
   0xa   : > { %p789_p6 = por %p90_p3, %p39_p0  ;;  %p97_p7 = scmp.lt.s32.totalorder %s732_s12, 3 }
   0xb   : > { %s108_s19 = sshll.u32 %s972_s1, 4  ;;  %s734_s21 = smov [#allocation5]   ;;  %s109_s19 = int_to_ptr.hbm [resolvable:$true] %s108_s19 }
   0xc   : > { %p797_p8 = pnand %p476_p5, %p97_p7  ;;  %s110_s22 = sshll.u32 %s734_s21, 4  ;;  %s111_s22 = int_to_ptr.vmem [resolvable:$true] %s110_s22 }
   0xd   : > { %s807_s23 = sadd.s32 1, %s732_s12   ;;  %s735_s24 = smov 128  }
   0xe   : > { %p549_p9 = pneg %p797_p8  ;;  %s736_s25 = smov 8  }
   0xf   : > { %s23_s26 = ssub.s32 %s732_s12, %s807_s23  ;;  %s26_s27 = sadd.s32 1, %s728_s11 }
  0x10   : > { %p550_p10 = pnand %p549_p9, %p40_p1  ;;  %p24_p12 = scmp.eq.s32.totalorder %s23_s26, 0 }
  0x11   : > { %p33_p13 = scmp.ne.s32.totalorder %s728_s11, %s724_s10  ;;  %p34_p0 = scmp.eq.s32.totalorder %s732_s12, 0 }
  0x12   : > { %552 = dma.hbm_to_vmem [thread:$0]  (!%p550_p10), %s109_s19, 2048, %s111_s22, [#allocation6], %s735_s24, %s735_s24, %s736_s25  }
  0x13   : > { %s819_s28 = scalar_select %p24_p12, %s728_s11, %s26_s27  }
  0x14   : > { %p823_p3 = por %p84_p2, %p33_p13  ;;  %p562_p5 = scmp.lt.s32.totalorder %s732_s12, 2 }
  0x15   : > { %s124_s30 = sand.u32 1, %s728_s11   ;;  %s491_s3 = sshll.u32 %s732_s12, 8 }
  0x16   : > { %p35_p7 = por %p34_p0, %p33_p13  ;;  %s479_s4 = sshll.u32 %s124_s30, 8 }
  0x17   : > { %s133_s7 = scalar_lea.hbm %s971_s0, %s491_s3  ;;  %s128_s14 = scalar_lea.vmem [#allocation2], %s479_s4 }
  0x18   : > { %s134_s8 = sshll.u32 %s133_s7, 4  ;;  %s136_s17 = sshll.u32 %s128_s14, 4  ;;  %s135_s8 = int_to_ptr.hbm [resolvable:$true] %s134_s8  ;;  %s137_s17 = int_to_ptr.vmem [resolvable:$true] %s136_s17 }
  0x19   : > { %p833_p9 = pnand %p562_p5, %p35_p7  ;;  %s125_s19 = scalar_lea.sflag [#allocation3], %s124_s30 }
  0x1a   : > { %s632_s21 = sshra.s32 %s135_s8, 4  ;;  %s639_s3 = scalar_lea.hbm %s971_s0, 512  ;;  %s633_s21 = int_to_ptr.hbm [resolvable:$true] %s632_s21 }
  0x1b   : > { %s634_s22 = scalar_lea.hbm %s633_s21, 256  ;;  %p636_p10 = pneg %p833_p9 }
  0x1c   : > { %p635_p2 = scmp.ne.s32.totalorder %s633_s21, %s634_s22  ;;  %p640_p0 = scmp.lt.s32.totalorder %s633_s21, %s971_s0 }
  0x1d   : > { %p641_p5 = scmp.lt.s32.totalorder %s639_s3, %s634_s22 }
  0x1e   : > { %p637_p12 = pnand %p636_p10, %p635_p2 }
  0x1f   : > { %p642_p7 = por %p641_p5, %p640_p0 }
  0x20   : > { %p638_p13 = pneg %p637_p12 }
  0x22   : > { %p643_p11 = pnand %p642_p7, %p638_p13 }
  0x24   : > { %646 = shalt.err (!%p643_p11)
}
  0x25   : > { %556 = dma.hbm_to_vmem [thread:$0]  (!%p833_p9), %s135_s8, 4096, %s137_s17, %s125_s19, %s735_s24, %s735_s24, %s736_s25  }
  0x26   : > { %148 = sbr.rel (%p797_p8) target bundleno = 271 (0x10f), region = 28  ;;  %s853_s30 = sand.u32 (!%p797_p8), 1, %s724_s10  }
  0x27   : > { %s483_s6 = sshll.u32 (!%p797_p8), %s853_s30, 8  ;;  %s151_s7 = scalar_lea.sflag (!%p797_p8), [#allocation3], %s853_s30 }
  0x28   : > { %s859_s14 = scalar_lea.vmem (!%p797_p8), [#allocation2], %s483_s6 }
  0x2b   : > { %707 = dma.done.wait (%p784_p4), %s151_s7, 4096  }
  0x2c   : > { %709 = vsyncadd (%p784_p4), %s151_s7, 4294963200 }
  0x2d   : > { %711 = dma.done.wait (%p40_p1), [#allocation6], 2048  }
  0x2e   : > { %713 = vsyncadd (%p40_p1), [#allocation6], 4294965248  ;;  %v230_v0 = vld [vmem:[#allocation5 + $0x78] sm:$0xff]  ;;  %v229_v1 = vld [vmem:[#allocation5 + $0x70] sm:$0xff]  ;;  %s903_s15 = scalar_lea.vmem [#allocation7], %s483_s6  ;;  %s492_s20 = sshll.u32 %s775_s13, 8 }
  0x2f   : > { %494 = vmatpush.msra.mxu2 %v230_v0  ;;  %495 = vmatpush.msra.mxu3 %v230_v0  ;;  %v228_v2 = vld [vmem:[#allocation5 + $0x68] sm:$0xff]  ;;  %v227_v3 = vld [vmem:[#allocation5 + $0x60] sm:$0xff]  ;;  %v226_v4 = vld [vmem:[#allocation5 + $0x58] sm:$0xff]  ;;  %s388_s8 = scalar_lea.hbm %s973_s2, %s492_s20  ;;  %s389_s17 = sshll.u32 %s903_s15, 4  ;;  %s390_s17 = int_to_ptr.vmem [resolvable:$true] %s389_s17 }
  0x30   : > { %231 = vmatpush.msra.mxu0 %v230_v0  ;;  %493 = vmatpush.msra.mxu1 %v230_v0  ;;  %v225_v5 = vld [vmem:[#allocation5 + $0x50] sm:$0xff]  ;;  %v224_v6 = vld [vmem:[#allocation5 + $0x48] sm:$0xff]  ;;  %v223_v7 = vld [vmem:[#allocation5 + $0x40] sm:$0xff]  ;;  %s391_s18 = sshll.u32 %s388_s8, 4  ;;  %s377_s13 = scalar_lea.sflag [#allocation4], %s853_s30  ;;  %s392_s18 = int_to_ptr.hbm [resolvable:$true] %s391_s18 }
  0x31   : > { %497 = vmatpush.msra.mxu2 %v229_v1  ;;  %498 = vmatpush.msra.mxu3 %v229_v1  ;;  %v222_v8 = vld [vmem:[#allocation5 + $0x38] sm:$0xff]  ;;  %v221_v9 = vld [vmem:[#allocation5 + $0x30] sm:$0xff]  ;;  %v220_v10 = vld [vmem:[#allocation5 + $0x28] sm:$0xff]  ;;  %s676_s19 = sshra.s32 %s392_s18, 4  ;;  %s682_s27 = scalar_lea.hbm %s973_s2, 512  ;;  %s677_s19 = int_to_ptr.hbm [resolvable:$true] %s676_s19 }
  0x32   : > { %232 = vmatpush.msra.mxu0 %v229_v1  ;;  %496 = vmatpush.msra.mxu1 %v229_v1  ;;  %v219_v11 = vld [vmem:[#allocation5 + $0x20] sm:$0xff]  ;;  %v218_v12 = vld [vmem:[#allocation5 + $0x18] sm:$0xff]  ;;  %v217_v13 = vld [vmem:[#allocation5 + $0x10] sm:$0xff]  ;;  %s678_s21 = scalar_lea.hbm %s677_s19, 256  ;;  %p683_p11 = scmp.lt.s32.totalorder %s677_s19, %s973_s2 }
  0x33   : > { %500 = vmatpush.msra.mxu2 %v228_v2  ;;  %501 = vmatpush.msra.mxu3 %v228_v2  ;;  %v216_v14 = vld [vmem:[#allocation5 + $0x8] sm:$0xff]  ;;  %v215_v15 = vld [vmem:[#allocation5] sm:$0xff]  ;;  %v201_v24 = vld [vmem:[%s859_s14 + $0x90] sm:$0xff]  ;;  %p679_p1 = scmp.ne.s32.totalorder %s677_s19, %s678_s21  ;;  %p684_p9 = scmp.lt.s32.totalorder %s682_s27, %s678_s21 }
  0x34   : > { %233 = vmatpush.msra.mxu0 %v228_v2  ;;  %499 = vmatpush.msra.mxu1 %v228_v2  ;;  %v199_v16 = vld [vmem:[%s859_s14 + $0x80] sm:$0xff]  ;;  %v200_v20 = vld [vmem:[%s859_s14 + $0x88] sm:$0xff]  ;;  %v209_v25 = vld [vmem:[%s859_s14 + $0xd0] sm:$0xff] }
  0x35   : > { %503 = vmatpush.msra.mxu2 %v227_v3  ;;  %504 = vmatpush.msra.mxu3 %v227_v3  ;;  %v207_v17 = vld [vmem:[%s859_s14 + $0xc0] sm:$0xff]  ;;  %v208_v21 = vld [vmem:[%s859_s14 + $0xc8] sm:$0xff]  ;;  %v185_v26 = vld [vmem:[%s859_s14 + $0x10] sm:$0xff]  ;;  %p680_p4 = pnand %p679_p1, %p823_p3  ;;  %p685_p2 = por %p684_p9, %p683_p11 }
  0x36   : > { %234 = vmatpush.msra.mxu0 %v227_v3  ;;  %502 = vmatpush.msra.mxu1 %v227_v3  ;;  %v183_v18 = vld [vmem:[%s859_s14] sm:$0xff]  ;;  %v184_v22 = vld [vmem:[%s859_s14 + $0x8] sm:$0xff]  ;;  %v193_v27 = vld [vmem:[%s859_s14 + $0x50] sm:$0xff] }
  0x37   : > { %506 = vmatpush.msra.mxu2 %v226_v4  ;;  %507 = vmatpush.msra.mxu3 %v226_v4  ;;  %v191_v19 = vld [vmem:[%s859_s14 + $0x40] sm:$0xff]  ;;  %v192_v23 = vld [vmem:[%s859_s14 + $0x48] sm:$0xff]  ;;  %v202_v28 = vld [vmem:[%s859_s14 + $0x98] sm:$0xff]  ;;  %p681_p8 = pneg %p680_p4 }
  0x38   : > { %235 = vmatpush.msra.mxu0 %v226_v4  ;;  %505 = vmatpush.msra.mxu1 %v226_v4  ;;  %v210_v29 = vld [vmem:[%s859_s14 + $0xd8] sm:$0xff]  ;;  %v203_v32 = vld [vmem:[%s859_s14 + $0xa0] sm:$0xff]  ;;  %v204_v36 = vld [vmem:[%s859_s14 + $0xa8] sm:$0xff] }
  0x39   : > { %509 = vmatpush.msra.mxu2 %v225_v5  ;;  %510 = vmatpush.msra.mxu3 %v225_v5  ;;  %v186_v30 = vld [vmem:[%s859_s14 + $0x18] sm:$0xff]  ;;  %v211_v33 = vld [vmem:[%s859_s14 + $0xe0] sm:$0xff]  ;;  %v212_v37 = vld [vmem:[%s859_s14 + $0xe8] sm:$0xff]  ;;  %p686_p10 = pnand %p685_p2, %p681_p8 }
  0x3a   : > { %236 = vmatpush.msra.mxu0 %v225_v5  ;;  %508 = vmatpush.msra.mxu1 %v225_v5  ;;  %v194_v31 = vld [vmem:[%s859_s14 + $0x58] sm:$0xff]  ;;  %v187_v34 = vld [vmem:[%s859_s14 + $0x20] sm:$0xff]  ;;  %v188_v38 = vld [vmem:[%s859_s14 + $0x28] sm:$0xff] }
  0x3b   : > { %512 = vmatpush.msra.mxu2 %v224_v6  ;;  %513 = vmatpush.msra.mxu3 %v224_v6  ;;  %v195_v35 = vld [vmem:[%s859_s14 + $0x60] sm:$0xff]  ;;  %v196_v39 = vld [vmem:[%s859_s14 + $0x68] sm:$0xff]  ;;  %v205_v40 = vld [vmem:[%s859_s14 + $0xb0] sm:$0xff] }
  0x3c   : > { %237 = vmatpush.msra.mxu0 %v224_v6  ;;  %511 = vmatpush.msra.mxu1 %v224_v6  ;;  %v213_v41 = vld [vmem:[%s859_s14 + $0xf0] sm:$0xff]  ;;  %v206_v44 = vld [vmem:[%s859_s14 + $0xb8] sm:$0xff] }
  0x3d   : > { %515 = vmatpush.msra.mxu2 %v223_v7  ;;  %516 = vmatpush.msra.mxu3 %v223_v7  ;;  %v189_v42 = vld [vmem:[%s859_s14 + $0x30] sm:$0xff]  ;;  %v214_v45 = vld [vmem:[%s859_s14 + $0xf8] sm:$0xff] }
  0x3e   : > { %238 = vmatpush.msra.mxu0 %v223_v7  ;;  %514 = vmatpush.msra.mxu1 %v223_v7  ;;  %v197_v43 = vld [vmem:[%s859_s14 + $0x70] sm:$0xff]  ;;  %v190_v46 = vld [vmem:[%s859_s14 + $0x38] sm:$0xff] }
  0x3f   : > { %518 = vmatpush.msra.mxu2 %v222_v8  ;;  %519 = vmatpush.msra.mxu3 %v222_v8  ;;  %v198_v47 = vld [vmem:[%s859_s14 + $0x78] sm:$0xff] }
  0x40   : > { %239 = vmatpush.msra.mxu0 %v222_v8  ;;  %517 = vmatpush.msra.mxu1 %v222_v8 }
  0x41   : > { %521 = vmatpush.msra.mxu2 %v221_v9  ;;  %522 = vmatpush.msra.mxu3 %v221_v9 }
  0x42   : > { %240 = vmatpush.msra.mxu0 %v221_v9  ;;  %520 = vmatpush.msra.mxu1 %v221_v9 }
  0x43   : > { %524 = vmatpush.msra.mxu2 %v220_v10  ;;  %525 = vmatpush.msra.mxu3 %v220_v10 }
  0x44   : > { %241 = vmatpush.msra.mxu0 %v220_v10  ;;  %523 = vmatpush.msra.mxu1 %v220_v10 }
  0x45   : > { %527 = vmatpush.msra.mxu2 %v219_v11  ;;  %528 = vmatpush.msra.mxu3 %v219_v11 }
  0x46   : > { %242 = vmatpush.msra.mxu0 %v219_v11  ;;  %526 = vmatpush.msra.mxu1 %v219_v11 }
  0x47   : > { %530 = vmatpush.msra.mxu2 %v218_v12  ;;  %531 = vmatpush.msra.mxu3 %v218_v12 }
  0x48   : > { %243 = vmatpush.msra.mxu0 %v218_v12  ;;  %529 = vmatpush.msra.mxu1 %v218_v12 }
  0x49   : > { %533 = vmatpush.msra.mxu2 %v217_v13  ;;  %534 = vmatpush.msra.mxu3 %v217_v13 }
  0x4a   : > { %244 = vmatpush.msra.mxu0 %v217_v13  ;;  %532 = vmatpush.msra.mxu1 %v217_v13 }
  0x4b   : > { %536 = vmatpush.msra.mxu2 %v216_v14  ;;  %537 = vmatpush.msra.mxu3 %v216_v14 }
  0x4c   : > { %245 = vmatpush.msra.mxu0 %v216_v14  ;;  %535 = vmatpush.msra.mxu1 %v216_v14 }
  0x4d   : > { %539 = vmatpush.msra.mxu2 %v215_v15  ;;  %540 = vmatpush.msra.mxu3 %v215_v15 }
  0x4e   : > { %295 = vmatmul.f32.vlgmr.msra.gmra.mxu2 %v199_v16  ;;  %319 = vmatmul.f32.vlgmr.msra.gmra.mxu3 %v207_v17 }
  0x4f   : > { %246 = vmatpush.msra.mxu0 %v215_v15  ;;  %538 = vmatpush.msra.mxu1 %v215_v15 }
  0x50   : > { %247 = vmatmul.f32.vlgmr.msra.gmra.mxu0 %v183_v18  ;;  %271 = vmatmul.f32.vlgmr.msra.gmra.mxu1 %v191_v19 }
  0x56   : > { %298 = vmatmul.f32.gmra.mxu2 %v200_v20  ;;  %322 = vmatmul.f32.gmra.mxu3 %v208_v21 }
  0x58   : > { %250 = vmatmul.f32.gmra.mxu0 %v184_v22  ;;  %274 = vmatmul.f32.gmra.mxu1 %v192_v23 }
  0x5e   : > { %301 = vmatmul.f32.gmra.mxu2 %v201_v24  ;;  %325 = vmatmul.f32.gmra.mxu3 %v209_v25 }
  0x60   : > { %253 = vmatmul.f32.gmra.mxu0 %v185_v26  ;;  %277 = vmatmul.f32.gmra.mxu1 %v193_v27 }
  0x66   : > { %304 = vmatmul.f32.gmra.mxu2 %v202_v28  ;;  %328 = vmatmul.f32.gmra.mxu3 %v210_v29 }
  0x68   : > { %256 = vmatmul.f32.gmra.mxu0 %v186_v30  ;;  %280 = vmatmul.f32.gmra.mxu1 %v194_v31 }
  0x6e   : > { %307 = vmatmul.f32.gmra.mxu2 %v203_v32  ;;  %331 = vmatmul.f32.gmra.mxu3 %v211_v33 }
  0x70   : > { %259 = vmatmul.f32.gmra.mxu0 %v187_v34  ;;  %283 = vmatmul.f32.gmra.mxu1 %v195_v35 }
  0x76   : > { %310 = vmatmul.f32.gmra.mxu2 %v204_v36  ;;  %334 = vmatmul.f32.gmra.mxu3 %v212_v37 }
  0x78   : > { %262 = vmatmul.f32.gmra.mxu0 %v188_v38  ;;  %286 = vmatmul.f32.gmra.mxu1 %v196_v39 }
  0x7e   : > { %313 = vmatmul.f32.gmra.mxu2 %v205_v40  ;;  %337 = vmatmul.f32.gmra.mxu3 %v213_v41 }
  0x80   : > { %265 = vmatmul.f32.gmra.mxu0 %v189_v42  ;;  %289 = vmatmul.f32.gmra.mxu1 %v197_v43 }
  0x86   : > { %316 = vmatmul.f32.gmra.mxu2 %v206_v44  ;;  %340 = vmatmul.f32.gmra.mxu3 %v214_v45 }
  0x88   : > { %268 = vmatmul.f32.gmra.mxu0 %v190_v46  ;;  %292 = vmatmul.f32.gmra.mxu1 %v198_v47 }
  0xcd   : > { %v248_v48 = vpop.f32.mrf.mxu0  ;;  %v272_v49 = vpop.f32.mrf.mxu1 }
  0xce   : > { %344 = vst [vmem:[%s903_s15] sm:$0xff] %v248_v48 }
  0xcf   : > { %352 = vst [vmem:[%s903_s15 + $0x40] sm:$0xff] %v272_v49 }
  0xd1   : > { %v296_v50 = vpop.f32.mrf.mxu2  ;;  %v320_v51 = vpop.f32.mrf.mxu3 }
  0xd2   : > { %360 = vst [vmem:[%s903_s15 + $0x80] sm:$0xff] %v296_v50 }
  0xd3   : > { %368 = vst [vmem:[%s903_s15 + $0xc0] sm:$0xff] %v320_v51 }
  0xd5   : > { %v251_v52 = vpop.f32.mrf.mxu0  ;;  %v275_v53 = vpop.f32.mrf.mxu1 }
  0xd6   : > { %345 = vst [vmem:[%s903_s15 + $0x8] sm:$0xff] %v251_v52 }
  0xd7   : > { %353 = vst [vmem:[%s903_s15 + $0x48] sm:$0xff] %v275_v53 }
  0xd9   : > { %v299_v54 = vpop.f32.mrf.mxu2  ;;  %v323_v55 = vpop.f32.mrf.mxu3 }
  0xda   : > { %361 = vst [vmem:[%s903_s15 + $0x88] sm:$0xff] %v299_v54 }
  0xdb   : > { %369 = vst [vmem:[%s903_s15 + $0xc8] sm:$0xff] %v323_v55 }
  0xdd   : > { %v254_v56 = vpop.f32.mrf.mxu0  ;;  %v278_v57 = vpop.f32.mrf.mxu1 }
  0xde   : > { %346 = vst [vmem:[%s903_s15 + $0x10] sm:$0xff] %v254_v56 }
  0xdf   : > { %354 = vst [vmem:[%s903_s15 + $0x50] sm:$0xff] %v278_v57 }
  0xe1   : > { %v302_v58 = vpop.f32.mrf.mxu2  ;;  %v326_v59 = vpop.f32.mrf.mxu3 }
  0xe2   : > { %362 = vst [vmem:[%s903_s15 + $0x90] sm:$0xff] %v302_v58 }
  0xe3   : > { %370 = vst [vmem:[%s903_s15 + $0xd0] sm:$0xff] %v326_v59 }
  0xe5   : > { %v257_v60 = vpop.f32.mrf.mxu0  ;;  %v281_v61 = vpop.f32.mrf.mxu1 }
  0xe6   : > { %347 = vst [vmem:[%s903_s15 + $0x18] sm:$0xff] %v257_v60 }
  0xe7   : > { %355 = vst [vmem:[%s903_s15 + $0x58] sm:$0xff] %v281_v61 }
  0xe9   : > { %v305_v62 = vpop.f32.mrf.mxu2  ;;  %v329_v63 = vpop.f32.mrf.mxu3 }
  0xea   : > { %363 = vst [vmem:[%s903_s15 + $0x98] sm:$0xff] %v305_v62 }
  0xeb   : > { %371 = vst [vmem:[%s903_s15 + $0xd8] sm:$0xff] %v329_v63 }
  0xed   : > { %v260_v0 = vpop.f32.mrf.mxu0  ;;  %v284_v1 = vpop.f32.mrf.mxu1 }
  0xee   : > { %348 = vst [vmem:[%s903_s15 + $0x20] sm:$0xff] %v260_v0 }
  0xef   : > { %356 = vst [vmem:[%s903_s15 + $0x60] sm:$0xff] %v284_v1 }
  0xf1   : > { %v308_v2 = vpop.f32.mrf.mxu2  ;;  %v332_v3 = vpop.f32.mrf.mxu3 }
  0xf2   : > { %364 = vst [vmem:[%s903_s15 + $0xa0] sm:$0xff] %v308_v2 }
  0xf3   : > { %372 = vst [vmem:[%s903_s15 + $0xe0] sm:$0xff] %v332_v3 }
  0xf5   : > { %v263_v4 = vpop.f32.mrf.mxu0  ;;  %v287_v5 = vpop.f32.mrf.mxu1 }
  0xf6   : > { %349 = vst [vmem:[%s903_s15 + $0x28] sm:$0xff] %v263_v4 }
  0xf7   : > { %357 = vst [vmem:[%s903_s15 + $0x68] sm:$0xff] %v287_v5 }
  0xf9   : > { %v311_v6 = vpop.f32.mrf.mxu2  ;;  %v335_v7 = vpop.f32.mrf.mxu3 }
  0xfa   : > { %365 = vst [vmem:[%s903_s15 + $0xa8] sm:$0xff] %v311_v6 }
  0xfb   : > { %373 = vst [vmem:[%s903_s15 + $0xe8] sm:$0xff] %v335_v7 }
  0xfd   : > { %v266_v8 = vpop.f32.mrf.mxu0  ;;  %v290_v9 = vpop.f32.mrf.mxu1 }
  0xfe   : > { %350 = vst [vmem:[%s903_s15 + $0x30] sm:$0xff] %v266_v8 }
  0xff   : > { %358 = vst [vmem:[%s903_s15 + $0x70] sm:$0xff] %v290_v9 }
 0x101   : > { %v314_v10 = vpop.f32.mrf.mxu2  ;;  %v338_v11 = vpop.f32.mrf.mxu3 }
 0x102   : > { %366 = vst [vmem:[%s903_s15 + $0xb0] sm:$0xff] %v314_v10 }
 0x103   : > { %374 = vst [vmem:[%s903_s15 + $0xf0] sm:$0xff] %v338_v11 }
 0x105   : > { %v269_v12 = vpop.f32.mrf.mxu0  ;;  %v293_v13 = vpop.f32.mrf.mxu1 }
 0x106   : > { %351 = vst [vmem:[%s903_s15 + $0x38] sm:$0xff] %v269_v12 }
 0x107   : > { %359 = vst [vmem:[%s903_s15 + $0x78] sm:$0xff] %v293_v13 }
 0x109   : > { %v317_v14 = vpop.f32.mrf.mxu2  ;;  %v341_v15 = vpop.f32.mrf.mxu3 }
 0x10a   : > { %367 = vst [vmem:[%s903_s15 + $0xb8] sm:$0xff] %v317_v14 }
 0x10b   : > { %375 = vst [vmem:[%s903_s15 + $0xf8] sm:$0xff] %v341_v15 }
 0x10c   : > { %689 = shalt.err (!%p686_p10)
}
 0x10d   : > { %s737_s5 = smov 128   ;;  %s738_s30 = smov 8  }
 0x10e   : > { %547 = dma.vmem_to_hbm [thread:$0]  (%p823_p3), %s390_s17, 4096, %s392_s18, %s377_s13, %s737_s5, %s737_s5, %s738_s30  }
 0x10f PF: > { %s406_s6 = sand.u32 1, %s720_s9   ;;  %p979_p12 = scmp.ge.s32.totalorder %s732_s12, 2 }
 0x110   : > { %s407_s7 = scalar_lea.sflag [#allocation4], %s406_s6 }
 0x111   : > { %p558_p13 = pnand %p979_p12, %p789_p6 }
 0x113   : > { %p559_p0 = pneg %p558_p13 }
 0x115   : > { %715 = dma.done.wait (%p559_p0), %s407_s7, 4096  }
 0x116   : > { %717 = vsyncadd (%p559_p0), %s407_s7, 4294963200  ;;  %p16_p5 = scmp.ge.s32.totalorder %s807_s23, 4   ;;  %s980_s9 = smov %s724_s10 }
 0x117   : > { %s981_s10 = smov %s728_s11  ;;  %s982_s11 = smov %s819_s28 }
 0x118   : > { %s983_s12 = smov %s807_s23  ;;  %18 = sbr.rel (!%p16_p5) target bundleno = 6 (0x6), region = 77 }
 0x11d   :  { %413 = vsyncpa [#allocation3], 1 }
 0x11e   :  { %415 = vsyncpa [#allocation3 + $0x1], 1 }
 0x11f   :  { %416 = vsyncpa [#allocation6], 1 }
 0x120   :  { %417 = vsyncpa [#allocation4], 1 }
 0x121   :  { %419 = vsyncpa [#allocation4 + $0x1], 1 }

</bundles_post_ra>
